<compile_context>
chip_gen: v7x
topology: tpu7x:2x2x1
jax: 0.10.0
libtpu: 0.0.40
codegen_flags: <defaults>
</compile_context>

<pallas_src>
import functools

import jax
import jax.numpy as jnp
from jax.experimental import pallas as pl
from jax.experimental.pallas import tpu as pltpu


def _fused_leaky_relu_kernel(x_ref, b_ref, o_ref, *, negative_slope, scale,
                             use_max):
    # x_ref: (row_tile, lane_tile); b_ref: (row_tile, 1) or (1, lane_tile).
    v = x_ref[...] + b_ref[...]
    if use_max:
        # max(v*s, v*slope*s) == leaky_relu(v)*s for 0<=slope<=1, s>0.
        o_ref[...] = jnp.maximum(v * scale, v * (negative_slope * scale))
    else:
        o_ref[...] = jnp.where(v >= 0, v * scale, v * (negative_slope * scale))


def _pick_lane_tile(L, max_lane_tile):
    """Largest 128-dense lane tile <= max_lane_tile whose L-remainder is also
    128-dense (ideally zero), to avoid masked partial stores on edge blocks."""
    if L <= max_lane_tile:
        return L
    base = (max_lane_tile // 128) * 128
    for cand in range(base, 127, -128):        # prefer an exact divisor of L
        if L % cand == 0:
            return cand
    for cand in range(base, 127, -128):        # else a 128-dense remainder
        if (L % cand) % 128 == 0:
            return cand
    return base


def _pick_row_tile(R, lane_tile, itemsize, target_block_bytes, sublane):
    rows_budget = max(1, target_block_bytes // max(1, lane_tile * itemsize))
    if rows_budget >= R:
        # Whole array fits one block.  Still split the row axis in two when
        # possible so v7x's two TensorCores both get a "parallel" grid step.
        if R >= 2 * sublane:
            half = -(-R // 2)
            row_tile = ((half + sublane - 1) // sublane) * sublane
            return row_tile if row_tile < R else R
        return R
    return min(R, max(sublane, (rows_budget // sublane) * sublane))


def fused_leaky_relu(x_nchw, bias, negative_slope=0.2, scale=2 ** 0.5,
                     target_block_bytes=2 * 1024 * 1024, max_lane_tile=4096):
    """x_nchw: (N, C, H, W), bias: (C,). Returns (N, C, H, W)."""
    N, C, H, W = x_nchw.shape
    HW = H * W
    dtype = x_nchw.dtype
    itemsize = jnp.dtype(dtype).itemsize
    sublane = max(8, 32 // itemsize)           # 8 for f32, 16 for bf16, ...

    lane_dense_path = (HW < 128) or (HW % 128 != 0)
    if lane_dense_path:
        # (N, C*H*W): lane-dense stores for small / odd spatial sizes; bias is
        # a repeated row, broadcast across sublanes inside the kernel.
        R, L = N, C * HW
        x2d = x_nchw.reshape(R, L)
        b2d = jnp.repeat(bias.astype(dtype), HW).reshape(1, L)
    else:
        # (N*C, H*W): free contiguous flatten; bias is a per-row column.
        R, L = N * C, HW
        x2d = x_nchw.reshape(R, L)
        b2d = jnp.tile(bias.astype(dtype), N).reshape(R, 1)

    lane_tile = _pick_lane_tile(L, max_lane_tile)
    row_tile = _pick_row_tile(R, lane_tile, itemsize, target_block_bytes,
                              sublane)
    grid = (pl.cdiv(R, row_tile), pl.cdiv(L, lane_tile))

    if lane_dense_path:
        bias_spec = pl.BlockSpec((1, lane_tile), lambda i, j: (0, j))
        bias_block_bytes = lane_tile * itemsize
    else:
        bias_spec = pl.BlockSpec((row_tile, 1), lambda i, j: (i, 0))
        bias_block_bytes = row_tile * itemsize

    # Double-buffered input + output blocks + bias + slack; cap at 48 MiB so a
    # raised target_block_bytes never exceeds v7x's 64 MiB/TC physical VMEM.
    block_bytes = row_tile * lane_tile * itemsize
    vmem_limit = 2 * (2 * block_bytes + bias_block_bytes) + (2 << 20)
    vmem_limit = int(min(max(vmem_limit, 16 << 20), 48 << 20))

    use_max = (0.0 <= negative_slope <= 1.0) and (scale > 0.0)
    kernel = functools.partial(_fused_leaky_relu_kernel,
                               negative_slope=negative_slope, scale=scale,
                               use_max=use_max)

    out2d = pl.pallas_call(
        kernel,
        out_shape=jax.ShapeDtypeStruct((R, L), dtype),
        grid_spec=pltpu.PrefetchScalarGridSpec(
            num_scalar_prefetch=0,
            grid=grid,
            in_specs=[
                pl.BlockSpec((row_tile, lane_tile), lambda i, j: (i, j)),
                bias_spec,
            ],
            out_specs=pl.BlockSpec((row_tile, lane_tile), lambda i, j: (i, j)),
        ),
        compiler_params=pltpu.CompilerParams(
            dimension_semantics=("parallel", "parallel"),
            vmem_limit_bytes=vmem_limit),
        cost_estimate=pl.CostEstimate(
            flops=3 * R * L,
            transcendentals=0,
            bytes_accessed=2 * R * L * itemsize + b2d.size * itemsize),
    )(x2d, b2d)

    return out2d.reshape(N, C, H, W)


if __name__ == "__main__":
    key = jax.random.PRNGKey(0)
    kx, kb = jax.random.split(key)

    negative_slope = 0.2
    scale = 2 ** 0.5

    def ref_fn(x, bias):
        v = x + bias.reshape(1, -1, 1, 1)
        return jnp.where(v >= 0, v, v * negative_slope) * scale

    # 1) Module-scale shapes; H*W = 256 is 128-dense -> (N*C, H*W) path.
    N, C, H, W = 2, 4, 16, 16
    x = jax.random.normal(kx, (N, C, H, W), dtype=jnp.float32)
    bias = 0.1 * jax.random.normal(kb, (C,), dtype=jnp.float32)
    out = jax.block_until_ready(fused_leaky_relu(x, bias, negative_slope, scale))
    assert out.shape == (N, C, H, W)
    assert jnp.allclose(out, ref_fn(x, bias), atol=1e-6, rtol=1e-5)

    # 2) Small / odd spatial (H*W = 49 < 128) -> lane-dense (N, C*H*W) path.
    Ns, Cs, Hs, Ws = 2, 8, 7, 7
    xs = jax.random.normal(kx, (Ns, Cs, Hs, Ws), dtype=jnp.float32)
    biass = 0.1 * jax.random.normal(kb, (Cs,), dtype=jnp.float32)
    outs = jax.block_until_ready(
        fused_leaky_relu(xs, biass, negative_slope, scale))
    assert outs.shape == (Ns, Cs, Hs, Ws)
    assert jnp.allclose(outs, ref_fn(xs, biass), atol=1e-6, rtol=1e-5)

    # 3) Multi-block grid with a row edge block (R=24, row_tile=16).
    N2, C2, H2, W2 = 3, 8, 32, 32
    x2 = jax.random.normal(kx, (N2, C2, H2, W2), dtype=jnp.float32)
    bias2 = 0.1 * jax.random.normal(kb, (C2,), dtype=jnp.float32)
    out2 = jax.block_until_ready(
        fused_leaky_relu(x2, bias2, negative_slope, scale,
                         target_block_bytes=64 * 1024))
    assert out2.shape == (N2, C2, H2, W2)
    assert jnp.allclose(out2, ref_fn(x2, bias2), atol=1e-6, rtol=1e-5)

    # 4) H*W = 8192 > max_lane_tile -> lane tiling path (lane grid > 1).
    N3, C3, H3, W3 = 1, 2, 64, 128
    x3 = jax.random.normal(kx, (N3, C3, H3, W3), dtype=jnp.float32)
    bias3 = 0.1 * jax.random.normal(kb, (C3,), dtype=jnp.float32)
    out3 = jax.block_until_ready(
        fused_leaky_relu(x3, bias3, negative_slope, scale))
    assert out3.shape == (N3, C3, H3, W3)
    assert jnp.allclose(out3, ref_fn(x3, bias3), atol=1e-6, rtol=1e-5)

    print("KERNEL_OK")
</pallas_src>

<mosaic_0001>
module attributes {stable_mosaic.version = 11 : i64} {
  func.func @_fused_leaky_relu_kernel(%arg0: i32, %arg1: i32, %arg2: memref<8x256xf32, #tpu.memory_space<vmem>>, %arg3: memref<8x1xf32, #tpu.memory_space<vmem>>, %arg4: memref<8x256xf32, #tpu.memory_space<vmem>>) attributes {dimension_semantics = [#tpu.dimension_semantics<parallel>, #tpu.dimension_semantics<parallel>], iteration_bounds = array<i64: 1, 1>, scalar_prefetch = 0 : i64, scratch_operands = 0 : i64, tpu.core_type = #tpu.core_type<tc>, window_params = [{transform_indices = @transform_0, window_bounds = array<i64: 8, 256>}, {transform_indices = @transform_1, window_bounds = array<i64: 8, 1>}, {transform_indices = @transform_2, window_bounds = array<i64: 8, 256>}]} {
    %c0 = arith.constant 0 : index
    %c0_0 = arith.constant 0 : index
    %0 = vector.load %arg2[%c0, %c0_0] : memref<8x256xf32, #tpu.memory_space<vmem>>, vector<8x256xf32>
    %c0_1 = arith.constant 0 : index
    %c0_2 = arith.constant 0 : index
    %1 = vector.load %arg3[%c0_1, %c0_2] : memref<8x1xf32, #tpu.memory_space<vmem>>, vector<8x1xf32>
    %2 = vector.broadcast %1 : vector<8x1xf32> to vector<8x256xf32>
    %3 = arith.addf %0, %2 : vector<8x256xf32>
    %cst = arith.constant 1.41421354 : f32
    %4 = vector.broadcast %cst : f32 to vector<8x256xf32>
    %5 = arith.mulf %3, %4 : vector<8x256xf32>
    %cst_3 = arith.constant 0.282842726 : f32
    %6 = vector.broadcast %cst_3 : f32 to vector<8x256xf32>
    %7 = arith.mulf %3, %6 : vector<8x256xf32>
    %8 = arith.maximumf %5, %7 : vector<8x256xf32>
    %c0_4 = arith.constant 0 : index
    %c0_5 = arith.constant 0 : index
    %9 = vector.load %arg4[%c0_4, %c0_5] : memref<8x256xf32, #tpu.memory_space<vmem>>, vector<8x256xf32>
    tpu.vector_store %arg4[%c0_4, %c0_5], %8 {strides = array<i32>} : memref<8x256xf32, #tpu.memory_space<vmem>>, vector<8x256xf32>,
    return
  }
  func.func @transform_0(%arg0: i32, %arg1: i32) -> (i32, i32) {
    %c0_i32 = arith.constant 0 : i32
    return %arg0, %arg1 : i32, i32
  }
  func.func @transform_1(%arg0: i32, %arg1: i32) -> (i32, i32) {
    %c0_i32 = arith.constant 0 : i32
    %c0_i32_0 = arith.constant 0 : i32
    return %arg0, %c0_i32 : i32, i32
  }
  func.func @transform_2(%arg0: i32, %arg1: i32) -> (i32, i32) {
    %c0_i32 = arith.constant 0 : i32
    return %arg0, %arg1 : i32, i32
  }
}

</mosaic_0001>

<bundles_post_ra>
// kernel: tpu_custom_call.1
= control target key start
LH: loop header
LB: loop body
LE: loop exit
PB: predicated region body
PF: predicated region fallthrough
CT: control target
= control target key end

     0   :  { %7 = vsyncpa [#allocation3], 0  ;;  %s154_s0 = inlined_call_operand.hbm [shape: f32[8,256], index: 0, kind: input, shape index: {}]   ;;  %s155_s1 = inlined_call_operand.vmem [shape: f32[8,1], index: 1, kind: input, shape index: {}]   ;;  %s156_s2 = inlined_call_operand.hbm [shape: f32[8,256], index: 2, kind: output, shape index: {}]  }
   0x1   :  { %8 = vsyncpa [#allocation4], 0  ;;  %s109_s9 = smov [#allocation2]   ;;  %s61_s13 = scalar_lea.hbm %s154_s0, 256 }
   0x2   :  { %s15_s10 = sshll.u32 %s109_s9, 4  ;;  %p62_p0 = scmp.ne.s32.totalorder %s154_s0, %s61_s13  ;;  %s16_s10 = int_to_ptr.vmem [resolvable:$true] %s15_s10 }
   0x3   :  { %p65_p1 = scmp.lt.u32.totalorder %s61_s13, %s154_s0 }
   0x5   :  { %p67_p2 = pnand %p65_p1, %p62_p0 }
   0x7   :  { %70 = shalt.err (!%p67_p2)
}
   0x8   :  { %s71_s18 = scalar_lea.vmem %s16_s10, 256  ;;  %p76_p4 = scmp.lt.s32.totalorder %s16_s10, %s16_s10 }
   0x9   :  { %p72_p3 = scmp.ne.s32.totalorder %s16_s10, %s71_s18  ;;  %p77_p5 = scmp.lt.s32.totalorder %s71_s18, %s71_s18 }
   0xb   :  { %p78_p6 = por %p77_p5, %p76_p4 }
   0xd   :  { %p79_p7 = pnand %p78_p6, %p72_p3 }
   0xf   :  { %82 = shalt.err (!%p79_p7)
}
  0x10   :  { %18 = dma.hbm_to_vmem [thread:$0]  %s154_s0, 256, %s16_s10, [#allocation3]  }
  0x11   :  { %105 = dma.done.wait [#allocation3], 256  }
  0x12   :  { %106 = vsyncadd [#allocation3], 4294967040  ;;  %v110_v0 = vmov 0   ;;  %v26_v1 = vld [vmem:[%s155_s1] sm:$0xff]  ;;  %v25_v3 = vld [vmem:[#allocation2 + $0x8] sm:$0xff]  ;;  %s111_s23 = smov [#allocation5]  }
  0x13   :  { %60 = vset.pattern.permute.xlu0 %v110_v0  ;;  %v24_v2 = vld [vmem:[#allocation2] sm:$0xff]  ;;  %s48_s24 = sshll.u32 %s111_s23, 4  ;;  %s49_s24 = int_to_ptr.vmem [resolvable:$true] %s48_s24 }
  0x14   :  { %29 = vperm.xlu0 %60, %v26_v1   ;;  %s83_s0 = scalar_lea.vmem %s49_s24, 256  ;;  %p88_p9 = scmp.lt.s32.totalorder %s49_s24, %s49_s24 }
  0x15   :  { %p84_p8 = scmp.ne.s32.totalorder %s49_s24, %s83_s0  ;;  %p89_p10 = scmp.lt.s32.totalorder %s83_s0, %s83_s0 }
  0x17   :  { %p90_p11 = por %p89_p10, %p88_p9 }
  0x19   :  { %p91_p12 = pnand %p90_p11, %p84_p8 }
  0x93   :  { %v30_v4 = vpop.permute.xlu0 %29 }
  0x94   :  { %v32_v5 = vadd.f32 %v30_v4, %v24_v2  ;;  %v33_v6 = vadd.f32 %v30_v4, %v25_v3 }
  0x96   :  { %v34_v7 = vmul.f32 1.4142135, %v32_v5  ;;  %v35_v8 = vmul.f32 1.4142135, %v33_v6  ;;  %v36_v9 = vmul.f32 0.28284273, %v32_v5 }
  0x97   :  { %v37_v10 = vmul.f32 0.28284273, %v33_v6 }
  0x98   :  { %v38_v11 = vmax.f32 %v34_v7, %v36_v9 }
  0x99   :  { %v39_v12 = vmax.f32 %v35_v8, %v37_v10 }
  0x9a   :  { %40 = vst [vmem:[#allocation5] sm:$0xff] %v38_v11 }
  0x9b   :  { %41 = vst [vmem:[#allocation5 + $0x8] sm:$0xff] %v39_v12 }
  0x9c   :  { %94 = shalt.err (!%p91_p12)
}
  0x9d   :  { %s95_s26 = scalar_lea.hbm %s156_s2, 256 }
  0x9e   :  { %p96_p13 = scmp.ne.s32.totalorder %s156_s2, %s95_s26  ;;  %p99_p0 = scmp.lt.u32.totalorder %s95_s26, %s156_s2 }
  0xa0   :  { %p101_p1 = pnand %p99_p0, %p96_p13 }
  0xa2   :  { %104 = shalt.err (!%p101_p1)
}
  0xa3   :  { %51 = dma.vmem_to_hbm [thread:$0]  %s49_s24, 256, %s156_s2, [#allocation4]  }
  0xa4   :  { %107 = dma.done.wait [#allocation4], 256  }
  0xa5   :  { %108 = vsyncadd [#allocation4], 4294967040 }
  0xa6   :  { %55 = vsyncpa [#allocation3], 1 }
  0xa7   :  { %56 = vsyncpa [#allocation4], 1 }

</bundles_post_ra>
